<compile_context>
chip_gen: v5e
topology: v5e:2x2
jax: 0.10.0
libtpu: 0.0.40
codegen_flags: <defaults>
</compile_context>

<pallas_src>
import functools

import jax
import jax.numpy as jnp
from jax.experimental import pallas as pl
from jax.experimental.pallas import tpu as pltpu


# ----------------------------------------------------------------------------
# Small host-side helpers (trace-time only).
# ----------------------------------------------------------------------------
def _round_up(x, m):
    return ((x + m - 1) // m) * m


def _floor_mult(x, m):
    return max(m, (int(x) // m) * m)


def _largest_divisor_tile(total, unit, cap):
    """Largest multiple of `unit` that divides `total` and is <= cap."""
    cap = max(unit, min(int(cap), total))
    best = unit
    for d in range(unit, total + 1, unit):
        if total % d == 0 and d <= cap:
            best = d
    return best


def _pad2(x, rows, cols):
    pr, pc = rows - x.shape[0], cols - x.shape[1]
    if pr == 0 and pc == 0:
        return x
    return jnp.pad(x, ((0, pr), (0, pc)))


def _vmem_budget_bytes():
    """Generation-aware VMEM budget with headroom for compiler scratch."""
    try:
        phys = int(pltpu.get_tpu_info().vmem_capacity_bytes)
    except Exception:  # interpret mode / unknown chip
        phys = 128 * 1024 * 1024
    # ~100 MiB on 128-MiB chips (v5e/v6e), ~50 MiB on 64-MiB chips (v7x).
    return max(24 << 20, min(int(phys * 0.80), phys - (12 << 20)))


def _probe_tiling(P, cap_rows, target=512):
    """Pick (tile_p, Pp): pad P up to tile_p instead of shrinking tile_p."""
    pp_raw = _round_up(P, 8)
    tile_p = min(target, _floor_mult(cap_rows, 8))
    if pp_raw <= tile_p:
        return pp_raw, pp_raw
    return tile_p, _round_up(P, tile_p)


# ----------------------------------------------------------------------------
# Stage 1: fused pairwise matrix + reciprocal of the normalization row.
# ----------------------------------------------------------------------------
def _pairwise_kernel(ab_ref, g1_ref, g2_ref, g3_ref, pw_ref, inv_ref, *,
                     inv_n):
    """One (tile_g, tile_c) tile of pw_comb plus the running column sums.

    Grid: (column slabs ["parallel"], row tiles ["arbitrary"]).
    ab_ref : SMEM (6,) f32 [alpha1..3, beta1..3]
    g*_ref : VMEM (tile_g, tile_c) gallery tiles
    pw_ref : VMEM (tile_g, tile_c) fused pairwise tile (output)
    inv_ref: VMEM (1, tile_c) resident accumulator; on the last row tile it is
             turned into 1/normalizes so Stage 2 never divides.
    """
    j = pl.program_id(0)          # column-slab index (parallel)
    i = pl.program_id(1)          # row-tile index (arbitrary / accumulating)
    tile_g, tile_c = g1_ref.shape

    b1, b2, b3 = ab_ref[3], ab_ref[4], ab_ref[5]
    a_sum = ab_ref[0] + ab_ref[1] + ab_ref[2]

    @pl.when(i == 0)
    def _():
        inv_ref[...] = jnp.zeros_like(inv_ref) + a_sum

    # Off-diagonal mask with 1/(G-1) folded in (single select, no extra muls).
    row = jax.lax.broadcasted_iota(jnp.int32, (tile_g, tile_c), 0) + i * tile_g
    col = jax.lax.broadcasted_iota(jnp.int32, (tile_g, tile_c), 1) + j * tile_c
    mask = jnp.where(row == col, jnp.float32(0.0), jnp.float32(inv_n))

    # Fuse the three beta-weighted gallery matrices into one (linear, so
    # masking the fused diagonal == masking each separately).
    pw = (g1_ref[...] * b1 + g2_ref[...] * b2 + g3_ref[...] * b3) * mask
    pw_ref[...] = pw
    inv_ref[...] += jnp.sum(pw, axis=0, keepdims=True)

    @pl.when(i == pl.num_programs(1) - 1)
    def _():
        inv_ref[...] = pl.reciprocal(inv_ref[...], approx=False)


# ----------------------------------------------------------------------------
# Stage 2a: mean-field iterations, pw_comb fully VMEM-resident.
# ----------------------------------------------------------------------------
def _meanfield_resident_kernel(ab_ref, p1_ref, p2_ref, p3_ref, pw_ref, inv_ref,
                               out_ref, *, layer_num):
    """Mean-field loop for one tile of probe rows (one matmul per layer)."""
    a1, a2, a3 = ab_ref[0], ab_ref[1], ab_ref[2]
    p1, p2, p3 = p1_ref[...], p2_ref[...], p3_ref[...]

    # Loop invariants hoisted: unary term and precomputed 1/normalizes.
    unary = p1 * a1 + p2 * a2 + p3 * a3
    inv_norm = inv_ref[...]
    pw = pw_ref[...]

    mu = (p1 + p2 + p3) * jnp.float32(1.0 / 3.0)
    for _ in range(layer_num):                 # small static trip -> unrolled
        mu = (unary
              + jnp.dot(mu, pw, preferred_element_type=jnp.float32)
              ) * inv_norm
    out_ref[...] = mu.astype(out_ref.dtype)


# ----------------------------------------------------------------------------
# Stage 2b: mean-field iterations, pw_comb K-streamed from HBM (large Gp).
# ----------------------------------------------------------------------------
def _meanfield_stream_kernel(ab_ref, p1_ref, p2_ref, p3_ref, pw_ref, inv_ref,
                             out_ref, mu_ref, acc_ref, unary_ref):
    """Grid: (probe tiles ["parallel"], layers, K slabs) -- both inner axes
    "arbitrary". mu is stored K-slab-major so the per-slab matmul operand is a
    dynamic first-axis index (no dynamic lane slicing)."""
    l = pl.program_id(1)
    k = pl.program_id(2)
    nk = pl.num_programs(2)
    tile_k = pw_ref.shape[0]

    @pl.when(jnp.logical_and(l == 0, k == 0))
    def _():
        a1, a2, a3 = ab_ref[0], ab_ref[1], ab_ref[2]
        p1, p2, p3 = p1_ref[...], p2_ref[...], p3_ref[...]
        unary_ref[...] = p1 * a1 + p2 * a2 + p3 * a3
        mu0 = (p1 + p2 + p3) * jnp.float32(1.0 / 3.0)
        for kk in range(mu_ref.shape[0]):      # static unroll: slab-ify mu0
            mu_ref[kk] = mu0[:, kk * tile_k:(kk + 1) * tile_k]

    @pl.when(k == 0)
    def _():
        acc_ref[...] = jnp.zeros_like(acc_ref)

    acc_ref[...] += jnp.dot(mu_ref[k], pw_ref[...],
                            preferred_element_type=jnp.float32)

    @pl.when(k == nk - 1)
    def _():
        mu_new = (unary_ref[...] + acc_ref[...]) * inv_ref[...]
        for kk in range(mu_ref.shape[0]):
            mu_ref[kk] = mu_new[:, kk * tile_k:(kk + 1) * tile_k]
        # out_ref is only DMA'd back to HBM when the probe-tile index changes,
        # so overwriting it once per layer is a cheap VMEM store.
        out_ref[...] = mu_new.astype(out_ref.dtype)


# ----------------------------------------------------------------------------
# Wrapper
# ----------------------------------------------------------------------------
def mulcrf_mf_forward(weights, probe1, gallery1, probe2, gallery2, probe3,
                      gallery3, layer_num=3, *, _force_stream=False,
                      _max_tile_k=None):
    """JAX/Pallas equivalent of MULCRF_MF.forward."""
    probe1 = jnp.asarray(probe1, jnp.float32)
    probe2 = jnp.asarray(probe2, jnp.float32)
    probe3 = jnp.asarray(probe3, jnp.float32)
    gallery1 = jnp.asarray(gallery1, jnp.float32)
    gallery2 = jnp.asarray(gallery2, jnp.float32)
    gallery3 = jnp.asarray(gallery3, jnp.float32)

    P, G = probe1.shape
    assert gallery1.shape == (G, G)

    # Parameter glue: softmax over the 6 raw weights (F.softmax on 1-D).
    ab = jax.nn.softmax(jnp.asarray(weights, jnp.float32))
    inv_n = 1.0 / float(G - 1)   # G == 1 is degenerate in the original too.

    Gp = _round_up(G, 128)
    budget = _vmem_budget_bytes()

    g1p = _pad2(gallery1, Gp, Gp)
    g2p = _pad2(gallery2, Gp, Gp)
    g3p = _pad2(gallery3, Gp, Gp)

    smem_spec = pl.BlockSpec(memory_space=pltpu.MemorySpace.SMEM)

    # ---- Stage 1: fused pairwise matrix + 1/normalizes --------------------
    # Column slab: full width for small/moderate G (fully contiguous DMA);
    # split into >=2 slabs for large G (megacore on v7x + smaller row tiles).
    if Gp >= 1024:
        tile_c = _largest_divisor_tile(Gp, 128, Gp // 2)
    else:
        tile_c = Gp
    # Working set ~13 f32 tiles (3 in + 1 out, double-buffered, + temporaries).
    row_cap = max(8, budget // (52 * tile_c))
    tile_g = _largest_divisor_tile(Gp, 8, row_cap)

    pw, inv_norm = pl.pallas_call(
        functools.partial(_pairwise_kernel, inv_n=inv_n),
        out_shape=(jax.ShapeDtypeStruct((Gp, Gp), jnp.float32),
                   jax.ShapeDtypeStruct((1, Gp), jnp.float32)),
        grid=(Gp // tile_c, Gp // tile_g),
        in_specs=[
            smem_spec,                                           # alphas/betas
            pl.BlockSpec((tile_g, tile_c), lambda j, i: (i, j)),  # gallery1
            pl.BlockSpec((tile_g, tile_c), lambda j, i: (i, j)),  # gallery2
            pl.BlockSpec((tile_g, tile_c), lambda j, i: (i, j)),  # gallery3
        ],
        out_specs=[
            pl.BlockSpec((tile_g, tile_c), lambda j, i: (i, j)),  # pw_comb
            pl.BlockSpec((1, tile_c), lambda j, i: (0, j)),       # 1/normalizes
        ],
        compiler_params=pltpu.CompilerParams(
            dimension_semantics=("parallel", "arbitrary"),
            vmem_limit_bytes=int(budget)),
    )(ab, g1p, g2p, g3p)

    # ---- Stage 2: mean-field iterations ------------------------------------
    pw_bytes = Gp * Gp * 4
    inv_bytes = 4 * Gp * 4
    min_rows = min(_round_up(P, 8), 128)
    resident_ok = (pw_bytes + inv_bytes + 13 * min_rows * Gp * 4
                   <= int(0.90 * budget))

    def run_resident():
        cap_rows = (int(0.90 * budget) - pw_bytes - inv_bytes) // (13 * Gp * 4)
        tile_p, Pp = _probe_tiling(P, cap_rows)
        p1p = _pad2(probe1, Pp, Gp)
        p2p = _pad2(probe2, Pp, Gp)
        p3p = _pad2(probe3, Pp, Gp)
        # Constant-index operands (pw, 1/norm) stay VMEM-resident across the
        # probe-tile axis; Buffered(1) drops their default double-buffer so a
        # single f32 copy of pw is held (critical on v7x's 64 MiB VMEM).
        pw_spec = pl.BlockSpec((Gp, Gp), lambda i: (0, 0),
                               pipeline_mode=pl.Buffered(1))
        inv_spec = pl.BlockSpec((1, Gp), lambda i: (0, 0),
                                pipeline_mode=pl.Buffered(1))
        return pl.pallas_call(
            functools.partial(_meanfield_resident_kernel,
                              layer_num=layer_num),
            out_shape=jax.ShapeDtypeStruct((Pp, Gp), jnp.float32),
            grid=(Pp // tile_p,),
            in_specs=[
                smem_spec,
                pl.BlockSpec((tile_p, Gp), lambda i: (i, 0)),     # probe1
                pl.BlockSpec((tile_p, Gp), lambda i: (i, 0)),     # probe2
                pl.BlockSpec((tile_p, Gp), lambda i: (i, 0)),     # probe3
                pw_spec,                                          # pw (resident)
                inv_spec,                                         # 1/normalizes
            ],
            out_specs=pl.BlockSpec((tile_p, Gp), lambda i: (i, 0)),
            compiler_params=pltpu.CompilerParams(
                dimension_semantics=("parallel",),                # megacore
                vmem_limit_bytes=int(budget)),
        )(ab, p1p, p2p, p3p, pw, inv_norm)

    def run_streaming():
        tile_k = _largest_divisor_tile(
            Gp, 128, max(128, int(0.25 * budget) // (2 * Gp * 4)))
        if _max_tile_k is not None:                 # test hook
            tile_k = _largest_divisor_tile(Gp, 128, min(tile_k, _max_tile_k))
        nk = Gp // tile_k
        pw_slab_bytes = 2 * tile_k * Gp * 4         # double-buffered slab
        cap_rows = max(8, (int(0.85 * budget) - pw_slab_bytes - inv_bytes)
                       // (12 * Gp * 4))
        tile_p, Pp = _probe_tiling(P, cap_rows)
        p1p = _pad2(probe1, Pp, Gp)
        p2p = _pad2(probe2, Pp, Gp)
        p3p = _pad2(probe3, Pp, Gp)
        return pl.pallas_call(
            _meanfield_stream_kernel,
            out_shape=jax.ShapeDtypeStruct((Pp, Gp), jnp.float32),
            grid=(Pp // tile_p, layer_num, nk),
            in_specs=[
                smem_spec,
                pl.BlockSpec((tile_p, Gp), lambda i, l, k: (i, 0)),  # probe1
                pl.BlockSpec((tile_p, Gp), lambda i, l, k: (i, 0)),  # probe2
                pl.BlockSpec((tile_p, Gp), lambda i, l, k: (i, 0)),  # probe3
                pl.BlockSpec((tile_k, Gp), lambda i, l, k: (k, 0)),  # pw slab
                pl.BlockSpec((1, Gp), lambda i, l, k: (0, 0)),       # 1/norm
            ],
            out_specs=pl.BlockSpec((tile_p, Gp), lambda i, l, k: (i, 0)),
            scratch_shapes=[
                pltpu.VMEM((nk, tile_p, tile_k), jnp.float32),   # mu (slabs)
                pltpu.VMEM((tile_p, Gp), jnp.float32),           # acc
                pltpu.VMEM((tile_p, Gp), jnp.float32),           # unary
            ],
            compiler_params=pltpu.CompilerParams(
                dimension_semantics=("parallel", "arbitrary", "arbitrary"),
                vmem_limit_bytes=int(budget)),
        )(ab, p1p, p2p, p3p, pw, inv_norm)

    use_stream = (_force_stream or not resident_ok) and layer_num >= 1
    if use_stream:
        out_p = run_streaming()
    else:
        try:
            out_p = run_resident()
        except Exception:
            # pl.Buffered(1) unsupported by this jax/libtpu combo, or the VMEM
            # estimate was too optimistic: the K-streaming kernel needs neither
            # single-buffering nor a resident (Gp,Gp) operand.
            if layer_num >= 1:
                out_p = run_streaming()
            else:
                raise

    return out_p[:P, :G]


# ----------------------------------------------------------------------------
# Pure-JAX reference mirroring the PyTorch forward, for verification.
# ----------------------------------------------------------------------------
def _reference(weights, p1, g1, p2, g2, p3, g3, layer_num=3):
    G = g1.shape[0]
    n = float(G - 1)
    hi = jax.lax.Precision.HIGHEST
    pw1 = (g1 - jnp.diag(jnp.diag(g1))) / n
    pw2 = (g2 - jnp.diag(jnp.diag(g2))) / n
    pw3 = (g3 - jnp.diag(jnp.diag(g3))) / n
    sm = jax.nn.softmax(weights)
    a1, a2, a3, b1, b2, b3 = [sm[i] for i in range(6)]
    s1 = jnp.sum(pw1, 0)
    s2 = jnp.sum(pw2, 0)
    s3 = jnp.sum(pw3, 0)
    normalizes = a1 + a2 + a3 + b1 * s1 + b2 * s2 + b3 * s3
    mu = (p1 + p2 + p3) / 3.0
    for _ in range(layer_num):
        mu = (p1 * a1 + jnp.dot(mu, pw1, precision=hi) * b1
              + p2 * a2 + jnp.dot(mu, pw2, precision=hi) * b2
              + p3 * a3 + jnp.dot(mu, pw3, precision=hi) * b3) / normalizes
    return mu


if __name__ == "__main__":
    base_key = jax.random.PRNGKey(0)

    def _run_case(idx, P, G, layer_num, **kw):
        ks = jax.random.split(jax.random.fold_in(base_key, idx), 7)
        p1 = jax.random.uniform(ks[0], (P, G), jnp.float32)
        p2 = jax.random.uniform(ks[1], (P, G), jnp.float32)
        p3 = jax.random.uniform(ks[2], (P, G), jnp.float32)
        g1 = jax.random.uniform(ks[3], (G, G), jnp.float32)
        g2 = jax.random.uniform(ks[4], (G, G), jnp.float32)
        g3 = jax.random.uniform(ks[5], (G, G), jnp.float32)
        # __init__ uses torch.zeros(6); exercise nontrivial weights too.
        w = 0.5 * jax.random.normal(ks[6], (6,), jnp.float32)

        out = mulcrf_mf_forward(w, p1, g1, p2, g2, p3, g3,
                                layer_num=layer_num, **kw)
        out = jax.block_until_ready(out)
        ref = _reference(w, p1, g1, p2, g2, p3, g3, layer_num=layer_num)
        assert out.shape == (P, G)
        assert jnp.allclose(out, ref, atol=1e-5, rtol=1e-5), (
            f"mismatch vs reference (case {idx})")

    # Small shapes: 8 probes, 16 gallery items (resident + streaming paths).
    _run_case(0, P=8, G=16, layer_num=3)
    _run_case(1, P=8, G=16, layer_num=3, _force_stream=True)
    # Non-multiple-of-128 gallery / non-multiple-of-8 probes, multi-K-slab
    # streaming (exercises padding, the layer grid axis and mu slab indexing).
    _run_case(2, P=24, G=200, layer_num=2)
    _run_case(3, P=24, G=200, layer_num=2, _force_stream=True, _max_tile_k=128)

    print("KERNEL_OK")
</pallas_src>

<mosaic_0001>
module attributes {stable_mosaic.version = 11 : i64} {
  func.func @_pairwise_kernel(%arg0: i32, %arg1: i32, %arg2: memref<6xf32, #tpu.memory_space<smem>>, %arg3: memref<128x128xf32, #tpu.memory_space<vmem>>, %arg4: memref<128x128xf32, #tpu.memory_space<vmem>>, %arg5: memref<128x128xf32, #tpu.memory_space<vmem>>, %arg6: memref<128x128xf32, #tpu.memory_space<vmem>>, %arg7: memref<1x128xf32, #tpu.memory_space<vmem>>) attributes {dimension_semantics = [#tpu.dimension_semantics<parallel>, #tpu.dimension_semantics<arbitrary>], iteration_bounds = array<i64: 1, 1>, scalar_prefetch = 0 : i64, scratch_operands = 0 : i64, tpu.core_type = #tpu.core_type<tc>, window_params = [{transform_indices = @transform_0, window_bounds = array<i64: 6>}, {transform_indices = @transform_1, window_bounds = array<i64: 128, 128>}, {transform_indices = @transform_2, window_bounds = array<i64: 128, 128>}, {transform_indices = @transform_3, window_bounds = array<i64: 128, 128>}, {transform_indices = @transform_4, window_bounds = array<i64: 128, 128>}, {transform_indices = @transform_5, window_bounds = array<i64: 1, 128>}]} {
    %c3 = arith.constant 3 : index
    %0 = memref.load %arg2[%c3] : memref<6xf32, #tpu.memory_space<smem>>
    %c4 = arith.constant 4 : index
    %1 = memref.load %arg2[%c4] : memref<6xf32, #tpu.memory_space<smem>>
    %c5 = arith.constant 5 : index
    %2 = memref.load %arg2[%c5] : memref<6xf32, #tpu.memory_space<smem>>
    %c0 = arith.constant 0 : index
    %3 = memref.load %arg2[%c0] : memref<6xf32, #tpu.memory_space<smem>>
    %c1 = arith.constant 1 : index
    %4 = memref.load %arg2[%c1] : memref<6xf32, #tpu.memory_space<smem>>
    %5 = arith.addf %3, %4 : f32
    %c2 = arith.constant 2 : index
    %6 = memref.load %arg2[%c2] : memref<6xf32, #tpu.memory_space<smem>>
    %7 = arith.addf %5, %6 : f32
    %c0_i32 = arith.constant 0 : i32
    %8 = arith.cmpi eq, %arg1, %c0_i32 : i32
    %9 = arith.extui %8 : i1 to i32
    %c0_i32_0 = arith.constant 0 : i32
    %10 = arith.cmpi ne, %9, %c0_i32_0 : i32
    scf.if %10 {
      %cst_18 = arith.constant 0.000000e+00 : f32
      %44 = vector.broadcast %cst_18 : f32 to vector<1x128xf32>
      %45 = vector.broadcast %7 : f32 to vector<1x128xf32>
      %46 = arith.addf %44, %45 : vector<1x128xf32>
      %c0_19 = arith.constant 0 : index
      %c0_20 = arith.constant 0 : index
      %47 = vector.load %arg7[%c0_19, %c0_20] : memref<1x128xf32, #tpu.memory_space<vmem>>, vector<1x128xf32>
      tpu.vector_store %arg7[%c0_19, %c0_20], %46 {strides = array<i32>} : memref<1x128xf32, #tpu.memory_space<vmem>>, vector<1x128xf32>,
    } else {
    }
    %11 = tpu.iota {dimensions = array<i32: 0>} : vector<128x128xi32>
    %c128_i32 = arith.constant 128 : i32
    %12 = arith.muli %arg1, %c128_i32 : i32
    %13 = vector.broadcast %12 : i32 to vector<128x128xi32>
    %14 = arith.addi %11, %13 : vector<128x128xi32>
    %15 = tpu.iota {dimensions = array<i32: 1>} : vector<128x128xi32>
    %c128_i32_1 = arith.constant 128 : i32
    %16 = arith.muli %arg0, %c128_i32_1 : i32
    %17 = vector.broadcast %16 : i32 to vector<128x128xi32>
    %18 = arith.addi %15, %17 : vector<128x128xi32>
    %19 = arith.cmpi eq, %14, %18 : vector<128x128xi32>
    %cst = arith.constant 0.000000e+00 : f32
    %cst_2 = arith.constant 0.0666666701 : f32
    %20 = vector.broadcast %cst : f32 to vector<128x128xf32>
    %21 = vector.broadcast %cst_2 : f32 to vector<128x128xf32>
    %22 = arith.select %19, %20, %21 : vector<128x128xi1>, vector<128x128xf32>
    %c0_3 = arith.constant 0 : index
    %c0_4 = arith.constant 0 : index
    %23 = vector.load %arg3[%c0_3, %c0_4] : memref<128x128xf32, #tpu.memory_space<vmem>>, vector<128x128xf32>
    %24 = vector.broadcast %0 : f32 to vector<128x128xf32>
    %25 = arith.mulf %23, %24 : vector<128x128xf32>
    %c0_5 = arith.constant 0 : index
    %c0_6 = arith.constant 0 : index
    %26 = vector.load %arg4[%c0_5, %c0_6] : memref<128x128xf32, #tpu.memory_space<vmem>>, vector<128x128xf32>
    %27 = vector.broadcast %1 : f32 to vector<128x128xf32>
    %28 = arith.mulf %26, %27 : vector<128x128xf32>
    %29 = arith.addf %25, %28 : vector<128x128xf32>
    %c0_7 = arith.constant 0 : index
    %c0_8 = arith.constant 0 : index
    %30 = vector.load %arg5[%c0_7, %c0_8] : memref<128x128xf32, #tpu.memory_space<vmem>>, vector<128x128xf32>
    %31 = vector.broadcast %2 : f32 to vector<128x128xf32>
    %32 = arith.mulf %30, %31 : vector<128x128xf32>
    %33 = arith.addf %29, %32 : vector<128x128xf32>
    %34 = arith.mulf %33, %22 : vector<128x128xf32>
    %c0_9 = arith.constant 0 : index
    %c0_10 = arith.constant 0 : index
    %35 = vector.load %arg6[%c0_9, %c0_10] : memref<128x128xf32, #tpu.memory_space<vmem>>, vector<128x128xf32>
    tpu.vector_store %arg6[%c0_9, %c0_10], %34 {strides = array<i32>} : memref<128x128xf32, #tpu.memory_space<vmem>>, vector<128x128xf32>,
    %c0_11 = arith.constant 0 : index
    %c0_12 = arith.constant 0 : index
    %36 = vector.load %arg7[%c0_11, %c0_12] : memref<1x128xf32, #tpu.memory_space<vmem>>, vector<1x128xf32>
    %cst_13 = arith.constant dense<0.000000e+00> : vector<128xf32>
    %37 = vector.multi_reduction <add>, %34, %cst_13 [0] : vector<128x128xf32> to vector<128xf32>
    %38 = vector.shape_cast %37 : vector<128xf32> to vector<1x128xf32>
    %39 = arith.addf %36, %38 : vector<1x128xf32>
    %c0_14 = arith.constant 0 : index
    %c0_15 = arith.constant 0 : index
    %40 = vector.load %arg7[%c0_14, %c0_15] : memref<1x128xf32, #tpu.memory_space<vmem>>, vector<1x128xf32>
    tpu.vector_store %arg7[%c0_14, %c0_15], %39 {strides = array<i32>} : memref<1x128xf32, #tpu.memory_space<vmem>>, vector<1x128xf32>,
    %c0_i32_16 = arith.constant 0 : i32
    %41 = arith.cmpi eq, %arg1, %c0_i32_16 : i32
    %42 = arith.extui %41 : i1 to i32
    %c0_i32_17 = arith.constant 0 : i32
    %43 = arith.cmpi ne, %42, %c0_i32_17 : i32
    scf.if %43 {
      %c0_18 = arith.constant 0 : index
      %c0_19 = arith.constant 0 : index
      %44 = vector.load %arg7[%c0_18, %c0_19] : memref<1x128xf32, #tpu.memory_space<vmem>>, vector<1x128xf32>
      %45 = tpu.reciprocal %44 : vector<1x128xf32> -> vector<1x128xf32>
      %c0_20 = arith.constant 0 : index
      %c0_21 = arith.constant 0 : index
      %46 = vector.load %arg7[%c0_20, %c0_21] : memref<1x128xf32, #tpu.memory_space<vmem>>, vector<1x128xf32>
      tpu.vector_store %arg7[%c0_20, %c0_21], %45 {strides = array<i32>} : memref<1x128xf32, #tpu.memory_space<vmem>>, vector<1x128xf32>,
    } else {
    }
    return
  }
  func.func @transform_0(%arg0: i32, %arg1: i32) -> i32 {
    %c0_i32 = arith.constant 0 : i32
    %c0_i32_0 = arith.constant 0 : i32
    return %c0_i32 : i32
  }
  func.func @transform_1(%arg0: i32, %arg1: i32) -> (i32, i32) {
    %c0_i32 = arith.constant 0 : i32
    return %arg1, %arg0 : i32, i32
  }
  func.func @transform_2(%arg0: i32, %arg1: i32) -> (i32, i32) {
    %c0_i32 = arith.constant 0 : i32
    return %arg1, %arg0 : i32, i32
  }
  func.func @transform_3(%arg0: i32, %arg1: i32) -> (i32, i32) {
    %c0_i32 = arith.constant 0 : i32
    return %arg1, %arg0 : i32, i32
  }
  func.func @transform_4(%arg0: i32, %arg1: i32) -> (i32, i32) {
    %c0_i32 = arith.constant 0 : i32
    return %arg1, %arg0 : i32, i32
  }
  func.func @transform_5(%arg0: i32, %arg1: i32) -> (i32, i32) {
    %c0_i32 = arith.constant 0 : i32
    %c0_i32_0 = arith.constant 0 : i32
    return %c0_i32, %arg0 : i32, i32
  }
}

</mosaic_0001>

<bundles_post_ra>
// kernel: tpu_custom_call.1
= control target key start
LH: loop header
LB: loop body
LE: loop exit
PB: predicated region body
PF: predicated region fallthrough
CT: control target
= control target key end

     0   :  { %11 = vsyncpa [#allocation5], 0  ;;  %s829_s0 = inlined_call_operand.hbm [shape: f32[6], index: 0, kind: input, shape index: {}]   ;;  %s830_s1 = inlined_call_operand.hbm [shape: f32[128,128], index: 1, kind: input, shape index: {}]   ;;  %s831_s2 = inlined_call_operand.hbm [shape: f32[128,128], index: 2, kind: input, shape index: {}]   ;;  %s832_s3 = inlined_call_operand.hbm [shape: f32[128,128], index: 3, kind: input, shape index: {}]   ;;  %s833_s4 = inlined_call_operand.hbm [shape: f32[128,128], index: 4, kind: output, shape index: {0}]   ;;  %s834_s5 = inlined_call_operand.hbm [shape: f32[1,128], index: 5, kind: output, shape index: {1}]  }
   0x1   :  { %12 = vsyncpa [#allocation3], 0 }
   0x2   :  { %13 = vsyncpa [#allocation8], 0 }
   0x3   :  { %14 = vsyncpa [#allocation4], 0 }
   0x4   :  { %15 = vsyncpa [#allocation12], 0  ;;  %s42_s20 = sshll.u32 %s831_s2, 4  ;;  %s569_s21 = smov [#allocation7]   ;;  %s43_s20 = int_to_ptr.hbm [resolvable:$true] %s42_s20 }
   0x5   :  { %s44_s22 = sshll.u32 %s569_s21, 4  ;;  %s21_s25 = sshll.u32 %s829_s0, 4  ;;  %s45_s22 = int_to_ptr.vmem [resolvable:$true] %s44_s22  ;;  %s22_s25 = int_to_ptr.hbm [resolvable:$true] %s21_s25 }
   0x6   :  { %s570_s26 = smov 128   ;;  %s571_s27 = smov 8  }
   0x7   :  { %50 = dma.hbm_to_vmem [thread:$0]  %s43_s20, 2048, %s45_s22, [#allocation8], %s570_s26, %s570_s26, %s571_s27  }
   0x8   :  { %s572_s28 = smov [#allocation2]   ;;  %s29_s2 = sshll.u32 %s830_s1, 4  ;;  %s30_s2 = int_to_ptr.hbm [resolvable:$true] %s29_s2 }
   0x9   :  { %24 = dma.hbm_to_smem %s22_s25, 16, %s572_s28, [#allocation5]  }
   0xa   :  { %s573_s6 = smov [#allocation6]   ;;  %s55_s0 = sshll.u32 %s832_s3, 4  ;;  %s56_s0 = int_to_ptr.hbm [resolvable:$true] %s55_s0 }
   0xb   :  { %s31_s7 = sshll.u32 %s573_s6, 4  ;;  %s574_s10 = smov [#allocation9]   ;;  %s32_s7 = int_to_ptr.vmem [resolvable:$true] %s31_s7 }
   0xc   :  { %37 = dma.hbm_to_vmem [thread:$0]  %s30_s2, 2048, %s32_s7, [#allocation3], %s570_s26, %s570_s26, %s571_s27  }
   0xd   :  { %s57_s11 = sshll.u32 %s574_s10, 4  ;;  %s58_s11 = int_to_ptr.vmem [resolvable:$true] %s57_s11 }
   0xe   :  { %63 = dma.hbm_to_vmem [thread:$0]  %s56_s0, 2048, %s58_s11, [#allocation8], %s570_s26, %s570_s26, %s571_s27  }
   0xf   :  { %559 = dma.done.wait [#allocation5], 16  }
  0x10   :  { %560 = vsyncadd [#allocation5], 4294967280 }
  0x11   :  { %561 = dma.done.wait [#allocation3], 2048  }
  0x12   :  { %562 = vsyncadd [#allocation3], 4294965248 }
  0x13   :  { %563 = dma.done.wait [#allocation8], 4096  }
  0x14   :  { %564 = vsyncadd [#allocation8], 4294963200 }
  0x15   :  { %80 = sfence }
  0x16   :  { %s84_s1 = sld [smem:[#allocation2]]  ;;  %v96_v0 = vlaneseq  ;;  %v168_v19 = vld [vmem:[#allocation6] sm:$0xff]  ;;  %v169_v20 = vld [vmem:[#allocation6 + $0x8] sm:$0xff]  ;;  %v170_v21 = vld [vmem:[#allocation6 + $0x10] sm:$0xff]  ;;  %v835_v24 = vmov 0.06666667  }
  0x17   :  { %s414_s3 = sld [smem:[#allocation2 + $0x1]]  ;;  %v171_v22 = vld [vmem:[#allocation6 + $0x18] sm:$0xff]  ;;  %v172_v23 = vld [vmem:[#allocation6 + $0x20] sm:$0xff]  ;;  %v173_v28 = vld [vmem:[#allocation6 + $0x28] sm:$0xff]  ;;  %s576_s18 = smov [#allocation10]  }
  0x18   :  { %s415_s12 = sld [smem:[#allocation2 + $0x2]]  ;;  %v97_v1 = vshrl.u32 %v96_v0, 7  ;;  %v631_v5 = vand.u32 127, %v96_v0  ;;  %v174_v29 = vld [vmem:[#allocation6 + $0x30] sm:$0xff]  ;;  %v175_v30 = vld [vmem:[#allocation6 + $0x38] sm:$0xff]  ;;  %v176_v36 = vld [vmem:[#allocation6 + $0x40] sm:$0xff] }
  0x19   :  { %s629_s15 = sld [smem:[#allocation2 + $0x3]]  ;;  %v177_v37 = vld [vmem:[#allocation6 + $0x48] sm:$0xff]  ;;  %v178_v41 = vld [vmem:[#allocation6 + $0x50] sm:$0xff]  ;;  %v201_v42 = vld [vmem:[#allocation7] sm:$0xff]  ;;  %s378_s19 = sshll.u32 %s576_s18, 4  ;;  %s379_s19 = int_to_ptr.vmem [resolvable:$true] %s378_s19 }
  0x1a   :  { %v98_v3 = vadd.s32 8, %v97_v1  ;;  %v99_v4 = vadd.s32 16, %v97_v1  ;;  %s633_s16 = sld [smem:[#allocation2 + $0x4]]  ;;  %v100_v6 = vadd.s32 24, %v97_v1  ;;  %v101_v7 = vadd.s32 32, %v97_v1  ;;  %v202_v43 = vld [vmem:[#allocation7 + $0x8] sm:$0xff] }
  0x1b   :  { %v102_v8 = vadd.s32 40, %v97_v1  ;;  %v103_v9 = vadd.s32 48, %v97_v1  ;;  %s635_s17 = sld [smem:[#allocation2 + $0x5]]  ;;  %v104_v10 = vadd.s32 56, %v97_v1  ;;  %v105_v11 = vadd.s32 64, %v97_v1  ;;  %v179_v46 = vld [vmem:[#allocation6 + $0x58] sm:$0xff] }
  0x1c   :  { %v106_v12 = vadd.s32 72, %v97_v1  ;;  %v107_v13 = vadd.s32 80, %v97_v1  ;;  %v637_v14 = vadd.s32 88, %v97_v1  ;;  %v639_v15 = vadd.s32 96, %v97_v1  ;;  %v180_v47 = vld [vmem:[#allocation6 + $0x60] sm:$0xff]  ;;  %v181_v48 = vld [vmem:[#allocation6 + $0x68] sm:$0xff] }
  0x1d   :  { %s86_s13 = sadd.f32 %s414_s3, %s84_s1  ;;  %v641_v16 = vadd.s32 104, %v97_v1  ;;  %v643_v17 = vadd.s32 112, %v97_v1  ;;  %v645_v18 = vadd.s32 120, %v97_v1  ;;  %vm136_vm0 = vcmp.eq.s32.totalorder %v97_v1, %v631_v5  ;;  %v182_v52 = vld [vmem:[#allocation6 + $0x70] sm:$0xff]  ;;  %v183_v53 = vld [vmem:[#allocation6 + $0x78] sm:$0xff]  ;;  %v205_v62 = vld [vmem:[#allocation7 + $0x20] sm:$0xff] }
  0x1e   :  { %vm137_vm1 = vcmp.eq.s32.totalorder %v98_v3, %v631_v5  ;;  %vm138_vm2 = vcmp.eq.s32.totalorder %v99_v4, %v631_v5  ;;  %vm139_vm3 = vcmp.eq.s32.totalorder %v100_v6, %v631_v5  ;;  %vm140_vm4 = vcmp.eq.s32.totalorder %v101_v7, %v631_v5  ;;  %v203_v58 = vld [vmem:[#allocation7 + $0x10] sm:$0xff]  ;;  %v204_v61 = vld [vmem:[#allocation7 + $0x18] sm:$0xff]  ;;  %v206_v63 = vld [vmem:[#allocation7 + $0x28] sm:$0xff]  ;;  %s380_s22 = sshll.u32 %s833_s4, 4  ;;  %s577_s4 = smov [#allocation11]   ;;  %s381_s22 = int_to_ptr.hbm [resolvable:$true] %s380_s22 }
  0x1f   :  { %s88_s14 = sadd.f32 %s415_s12, %s86_s13  ;;  %837 = vst [vmem:[#allocation18_spill] sm:$0xff] %v645_v18  ;;  %vm141_vm5 = vcmp.eq.s32.totalorder %v102_v8, %v631_v5  ;;  %vm142_vm6 = vcmp.eq.s32.totalorder %v103_v9, %v631_v5  ;;  %vm143_vm7 = vcmp.eq.s32.totalorder %v104_v10, %v631_v5  ;;  %vm144_vm8 = vcmp.eq.s32.totalorder %v105_v11, %v631_v5  ;;  %v207_v7 = vld [vmem:[#allocation7 + $0x30] sm:$0xff]  ;;  %v250_v8 = vld [vmem:[#allocation9] sm:$0xff]  ;;  %v251_v9 = vld [vmem:[#allocation9 + $0x8] sm:$0xff]  ;;  %s392_s23 = sshll.u32 %s577_s4, 4  ;;  %s393_s23 = int_to_ptr.vmem [resolvable:$true] %s392_s23 }
  0x20   :  { %vm145_vm9 = vcmp.eq.s32.totalorder %v106_v12, %v631_v5  ;;  %vm146_vm10 = vcmp.eq.s32.totalorder %v107_v13, %v631_v5  ;;  %v661_v25 = vsel %vm136_vm0, 0.0, %v835_v24  ;;  %v666_v26 = vsel %vm137_vm1, 0.0, %v835_v24  ;;  %v208_v13 = vld [vmem:[#allocation7 + $0x38] sm:$0xff] }
  0x21   :  { %v93_v2 = vstv %s88_s14  ;;  %v671_v27 = vsel %vm138_vm2, 0.0, %v835_v24  ;;  %v184_v31 = vstv %s629_s15  ;;  %v677_v32 = vsel %vm139_vm3, 0.0, %v835_v24 }
  0x22   :  { %95 = vst [vmem:[#allocation11] sm:$0x1] %v93_v2  ;;  %v682_v33 = vsel %vm140_vm4, 0.0, %v835_v24  ;;  %v687_v34 = vsel %vm141_vm5, 0.0, %v835_v24  ;;  %v692_v35 = vsel %vm142_vm6, 0.0, %v835_v24  ;;  %v697_v38 = vsel %vm143_vm7, 0.0, %v835_v24 }
  0x23   :  { %v702_v39 = vsel %vm144_vm8, 0.0, %v835_v24  ;;  %v707_v40 = vsel %vm145_vm9, 0.0, %v835_v24  ;;  %v710_v44 = vstv %s633_s16  ;;  %v715_v45 = vsel %vm146_vm10, 0.0, %v835_v24  ;;  %v216_v24 = vld [vmem:[#allocation7 + $0x78] sm:$0xff] }
  0x24   :  { %838 = vst [vmem:[#allocation19_spill] sm:$0xff] %v702_v39  ;;  %v185_v49 = vmul.f32 %v184_v31, %v168_v19  ;;  %v186_v50 = vmul.f32 %v184_v31, %v169_v20  ;;  %v718_v51 = vstv %s635_s17  ;;  %v187_v54 = vmul.f32 %v184_v31, %v170_v21  ;;  %v209_v19 = vld [vmem:[#allocation7 + $0x40] sm:$0xff]  ;;  %v210_v20 = vld [vmem:[#allocation7 + $0x48] sm:$0xff] }
  0x25   :  { %839 = vst [vmem:[#allocation20_spill] sm:$0xff] %v707_v40  ;;  %v188_v55 = vmul.f32 %v184_v31, %v171_v22  ;;  %v189_v56 = vmul.f32 %v184_v31, %v172_v23  ;;  %v190_v57 = vmul.f32 %v184_v31, %v173_v28  ;;  %v720_v59 = vmul.f32 %v184_v31, %v174_v29  ;;  %v211_v23 = vld [vmem:[#allocation7 + $0x50] sm:$0xff]  ;;  %v212_v28 = vld [vmem:[#allocation7 + $0x58] sm:$0xff] }
  0x26   :  { %840 = vst [vmem:[#allocation21_spill] sm:$0xff] %v715_v45  ;;  %v722_v60 = vmul.f32 %v184_v31, %v175_v30  ;;  %v218_v0 = vmul.f32 %v710_v44, %v201_v42  ;;  %v219_v1 = vmul.f32 %v710_v44, %v202_v43  ;;  %v726_v2 = vmul.f32 %v184_v31, %v176_v36  ;;  %v214_v42 = vld [vmem:[#allocation7 + $0x68] sm:$0xff]  ;;  %v257_v40 = vld [vmem:[#allocation9 + $0x38] sm:$0xff] }
  0x27   :  { %v728_v3 = vmul.f32 %v184_v31, %v177_v37  ;;  %v730_v4 = vmul.f32 %v184_v31, %v178_v41  ;;  %v732_v6 = vmul.f32 %v184_v31, %v179_v46  ;;  %v734_v10 = vmul.f32 %v184_v31, %v180_v47  ;;  %v252_v37 = vld [vmem:[#allocation9 + $0x10] sm:$0xff]  ;;  %v213_v41 = vld [vmem:[#allocation7 + $0x60] sm:$0xff]  ;;  %v253_v47 = vld [vmem:[#allocation9 + $0x18] sm:$0xff] }
  0x28   :  { %v736_v11 = vmul.f32 %v184_v31, %v181_v48  ;;  %v738_v12 = vmul.f32 %v184_v31, %v182_v52  ;;  %v220_v21 = vmul.f32 %v710_v44, %v203_v58  ;;  %v741_v22 = vmul.f32 %v184_v31, %v183_v53 }
  0x29   :  { %v221_v29 = vmul.f32 %v710_v44, %v204_v61  ;;  %v222_v30 = vmul.f32 %v710_v44, %v205_v62  ;;  %v223_v36 = vmul.f32 %v710_v44, %v206_v63  ;;  %v234_v43 = vadd.f32 %v218_v0, %v185_v49  ;;  %v254_v62 = vld [vmem:[#allocation9 + $0x20] sm:$0xff]  ;;  %v215_v63 = vld [vmem:[#allocation7 + $0x70] sm:$0xff]  ;;  %v255_v0 = vld [vmem:[#allocation9 + $0x28] sm:$0xff] }
  0x2a   :  { %v235_v46 = vadd.f32 %v219_v1, %v186_v50  ;;  %v267_v48 = vmul.f32 %v718_v51, %v250_v8  ;;  %v268_v52 = vmul.f32 %v718_v51, %v251_v9  ;;  %v224_v31 = vmul.f32 %v710_v44, %v207_v7 }
  0x2b   :  { %v225_v53 = vmul.f32 %v710_v44, %v208_v13  ;;  %v226_v58 = vmul.f32 %v710_v44, %v209_v19  ;;  %v227_v61 = vmul.f32 %v710_v44, %v210_v20  ;;  %v228_v45 = vmul.f32 %v710_v44, %v211_v23  ;;  %v256_v13 = vld [vmem:[#allocation9 + $0x30] sm:$0xff] }
  0x2c   :  { %v229_v49 = vmul.f32 %v710_v44, %v212_v28  ;;  %v236_v50 = vadd.f32 %v220_v21, %v187_v54  ;;  %v269_v1 = vmul.f32 %v718_v51, %v252_v37  ;;  %v230_v8 = vmul.f32 %v710_v44, %v213_v41  ;;  %v258_v37 = vld [vmem:[#allocation9 + $0x40] sm:$0xff] }
  0x2d   :  { %v231_v7 = vmul.f32 %v710_v44, %v214_v42  ;;  %v237_v9 = vadd.f32 %v221_v29, %v188_v55  ;;  %v270_v19 = vmul.f32 %v718_v51, %v253_v47  ;;  %v238_v20 = vadd.f32 %v222_v30, %v189_v56  ;;  %v259_v30 = vld [vmem:[#allocation9 + $0x48] sm:$0xff] }
  0x2e   :  { %v271_v18 = vmul.f32 %v718_v51, %v254_v62  ;;  %v283_v39 = vadd.f32 %v267_v48, %v234_v43  ;;  %v284_v23 = vadd.f32 %v268_v52, %v235_v46  ;;  %vm147_vm11 = vcmp.eq.s32.totalorder %v637_v14, %v631_v5 }
  0x2f   :  { %v232_v54 = vmul.f32 %v710_v44, %v215_v63  ;;  %v233_v21 = vmul.f32 %v710_v44, %v216_v24  ;;  %v239_v28 = vadd.f32 %v223_v36, %v190_v57  ;;  %v272_v55 = vmul.f32 %v718_v51, %v255_v0  ;;  %v260_v57 = vld [vmem:[#allocation9 + $0x50] sm:$0xff] }
  0x30   :  { %vm148_vm12 = vcmp.eq.s32.totalorder %v639_v15, %v631_v5  ;;  %v240_v56 = vadd.f32 %v224_v31, %v720_v59  ;;  %v241_v29 = vadd.f32 %v225_v53, %v722_v60  ;;  %v273_v41 = vmul.f32 %v718_v51, %v256_v13  ;;  %v261_v59 = vld [vmem:[#allocation9 + $0x58] sm:$0xff] }
  0x31   :  { %v285_v42 = vadd.f32 %v269_v1, %v236_v50  ;;  %vm149_vm13 = vcmp.eq.s32.totalorder %v641_v16, %v631_v5  ;;  %v242_v24 = vadd.f32 %v226_v58, %v726_v2  ;;  %v243_v44 = vadd.f32 %v227_v61, %v728_v3  ;;  %v262_v3 = vld [vmem:[#allocation9 + $0x60] sm:$0xff]  ;;  %v263_v58 = vld [vmem:[#allocation9 + $0x68] sm:$0xff] }
  0x32   :  { %v274_v36 = vmul.f32 %v718_v51, %v257_v40  ;;  %v286_v43 = vadd.f32 %v270_v19, %v237_v9  ;;  %vm150_vm14 = vcmp.eq.s32.totalorder %v643_v17, %v631_v5  ;;  %v275_v60 = vmul.f32 %v718_v51, %v258_v37 }
  0x33   :  { %v287_v46 = vadd.f32 %v271_v18, %v238_v20  ;;  %v299_v47 = vmul.f32 %v283_v39, %v661_v25  ;;  %v300_v48 = vmul.f32 %v284_v23, %v666_v26  ;;  %v244_v52 = vadd.f32 %v228_v45, %v730_v4  ;;  %v264_v26 = vld [vmem:[#allocation9 + $0x70] sm:$0xff] }
  0x34   :  { %v245_v2 = vadd.f32 %v229_v49, %v732_v6  ;;  %v276_v31 = vmul.f32 %v718_v51, %v259_v30  ;;  %v288_v40 = vadd.f32 %v272_v55, %v239_v28  ;;  %v246_v53 = vadd.f32 %v230_v8, %v734_v10  ;;  %v265_v6 = vld [vmem:[#allocation9 + $0x78] sm:$0xff] }
  0x35   :  { %v277_v61 = vmul.f32 %v718_v51, %v260_v57  ;;  %v289_v62 = vadd.f32 %v273_v41, %v240_v56  ;;  %v301_v18 = vmul.f32 %v285_v42, %v671_v27  ;;  %315 = vst [vmem:[#allocation10] sm:$0xff] %v299_v47  ;;  %v247_v25 = vadd.f32 %v231_v7, %v736_v11  ;;  %v845_v56 = vld [vmem:[#allocation21_spill] sm:$0xff] }
  0x36   :  { %v278_v39 = vmul.f32 %v718_v51, %v261_v59  ;;  %v290_v45 = vadd.f32 %v274_v36, %v241_v29  ;;  %v302_v4 = vmul.f32 %v286_v43, %v677_v32  ;;  %316 = vst [vmem:[#allocation10 + $0x8] sm:$0xff] %v300_v48  ;;  %v279_v63 = vmul.f32 %v718_v51, %v262_v3 }
  0x37   :  { %v291_v10 = vadd.f32 %v275_v60, %v242_v24  ;;  %v303_v49 = vmul.f32 %v287_v46, %v682_v33  ;;  %v332_v50 = vadd.f32 %v300_v48, %v299_v47  ;;  %317 = vst [vmem:[#allocation10 + $0x10] sm:$0xff] %v301_v18  ;;  %v248_v27 = vadd.f32 %v232_v54, %v738_v12  ;;  %v842_v54 = vld [vmem:[#allocation19_spill] sm:$0xff] }
  0x38   :  { %v280_v0 = vmul.f32 %v718_v51, %v263_v58  ;;  %v292_v11 = vadd.f32 %v276_v31, %v243_v44  ;;  %v304_v1 = vmul.f32 %v288_v40, %v687_v34  ;;  %318 = vst [vmem:[#allocation10 + $0x18] sm:$0xff] %v302_v4  ;;  %v281_v8 = vmul.f32 %v718_v51, %v264_v26 }
  0x39   :  { %v293_v32 = vadd.f32 %v277_v61, %v244_v52  ;;  %v305_v7 = vmul.f32 %v289_v62, %v692_v35  ;;  %v333_v9 = vadd.f32 %v332_v50, %v301_v18  ;;  %319 = vst [vmem:[#allocation10 + $0x20] sm:$0xff] %v303_v49  ;;  %v249_v13 = vadd.f32 %v233_v21, %v741_v22  ;;  %v843_v35 = vld [vmem:[#allocation18_spill] sm:$0xff]  ;;  %v844_v22 = vld [vmem:[#allocation20_spill] sm:$0xff]  ;;  %v331_v62 = vld [vmem:[#allocation11] sm:$0x1] }
  0x3a   :  { %v282_v33 = vmul.f32 %v718_v51, %v265_v6  ;;  %v294_v19 = vadd.f32 %v278_v39, %v245_v2  ;;  %v306_v12 = vmul.f32 %v290_v45, %v697_v38  ;;  %320 = vst [vmem:[#allocation10 + $0x28] sm:$0xff] %v304_v1  ;;  %v841_v20 = vmov 0.06666667  }
  0x3b   :  { %v163_v34 = vsel %vm147_vm11, 0.0, %v841_v20  ;;  %v295_v23 = vadd.f32 %v279_v63, %v246_v53  ;;  %v307_v28 = vmul.f32 %v291_v10, %v842_v54  ;;  %v334_v37 = vadd.f32 %v333_v9, %v302_v4  ;;  %321 = vst [vmem:[#allocation10 + $0x30] sm:$0xff] %v305_v7 }
  0x3c   :  { %vm151_vm15 = vcmp.eq.s32.totalorder %v843_v35, %v631_v5  ;;  %v164_v51 = vsel %vm148_vm12, 0.0, %v841_v20  ;;  %v296_v38 = vadd.f32 %v280_v0, %v247_v25  ;;  %v308_v21 = vmul.f32 %v292_v11, %v844_v22  ;;  %322 = vst [vmem:[#allocation10 + $0x38] sm:$0xff] %v306_v12 }
  0x3d   :  { %v165_v14 = vsel %vm149_vm13, 0.0, %v841_v20  ;;  %v297_v55 = vadd.f32 %v281_v8, %v248_v27  ;;  %v309_v29 = vmul.f32 %v293_v32, %v845_v56  ;;  %v335_v30 = vadd.f32 %v334_v37, %v303_v49  ;;  %323 = vst [vmem:[#allocation10 + $0x40] sm:$0xff] %v307_v28 }
  0x3e   :  { %v166_v15 = vsel %vm150_vm14, 0.0, %v841_v20  ;;  %v298_v41 = vadd.f32 %v282_v33, %v249_v13  ;;  %v310_v42 = vmul.f32 %v294_v19, %v163_v34  ;;  %324 = vst [vmem:[#allocation10 + $0x48] sm:$0xff] %v308_v21  ;;  %v167_v24 = vsel %vm151_vm15, 0.0, %v841_v20 }
  0x3f   :  { %v311_v44 = vmul.f32 %v295_v23, %v164_v51  ;;  %v336_v57 = vadd.f32 %v335_v30, %v304_v1  ;;  %325 = vst [vmem:[#allocation10 + $0x50] sm:$0xff] %v309_v29  ;;  %v312_v16 = vmul.f32 %v296_v38, %v165_v14  ;;  %v313_v36 = vmul.f32 %v297_v55, %v166_v15 }
  0x40   :  { %326 = vst [vmem:[#allocation10 + $0x58] sm:$0xff] %v310_v42  ;;  %v314_v5 = vmul.f32 %v298_v41, %v167_v24 }
  0x41   :  { %v337_v43 = vadd.f32 %v336_v57, %v305_v7  ;;  %327 = vst [vmem:[#allocation10 + $0x60] sm:$0xff] %v311_v44 }
  0x42   :  { %328 = vst [vmem:[#allocation10 + $0x68] sm:$0xff] %v312_v16 }
  0x43   :  { %v338_v17 = vadd.f32 %v337_v43, %v306_v12  ;;  %329 = vst [vmem:[#allocation10 + $0x70] sm:$0xff] %v313_v36 }
  0x44   :  { %330 = vst [vmem:[#allocation10 + $0x78] sm:$0xff] %v314_v5 }
  0x45   :  { %v339_v59 = vadd.f32 %v338_v17, %v307_v28  ;;  %386 = dma.vmem_to_hbm [thread:$0]  %s379_s19, 2048, %s381_s22, [#allocation4], %s570_s26, %s570_s26, %s571_s27  }
  0x46   :  { %s394_s26 = sshll.u32 %s834_s5, 4  ;;  %s395_s26 = int_to_ptr.hbm [resolvable:$true] %s394_s26 }
  0x47   :  { %v340_v60 = vadd.f32 %v339_v59, %v308_v21 }
  0x49   :  { %v341_v46 = vadd.f32 %v340_v60, %v309_v29 }
  0x4b   :  { %v342_v47 = vadd.f32 %v341_v46, %v310_v42 }
  0x4d   :  { %v343_v48 = vadd.f32 %v342_v47, %v311_v44 }
  0x4f   :  { %v344_v52 = vadd.f32 %v343_v48, %v312_v16 }
  0x51   :  { %v345_v2 = vadd.f32 %v344_v52, %v313_v36 }
  0x53   :  { %v346_v3 = vadd.f32 %v345_v2, %v314_v5 }
  0x55   :  { %v347_v31 = vrot.slane %v346_v3, 4 }
  0x57   :  { %v348_v40 = vadd.f32 %v347_v31, %v346_v3 }
  0x59   :  { %v349_v53 = vrot.slane %v348_v40, 2 }
  0x5b   :  { %v350_v58 = vadd.f32 %v349_v53, %v348_v40 }
  0x5d   :  { %v351_v61 = vrot.slane %v350_v58, 1 }
  0x5f   :  { %v352_v18 = vadd.f32 %v351_v61, %v350_v58 }
  0x61   :  { %v353_v25 = vadd.f32 %v352_v18, %v331_v62 }
  0x63   :  { %354 = vst [vmem:[#allocation11] sm:$0x1] %v353_v25 }
  0x6a   :  { %v358_v26 = vld [vmem:[#allocation11] sm:$0x1] }
  0x6b   :  { %425 = vrcp.f32 %v358_v26  ;;  %v370_v6 = vand.u32 2147483648, %v358_v26  ;;  %v368_v10 = vand.u32 2147483647, %v358_v26  ;;  %vm364_vm1 = vweird.f32 %v358_v26 }
  0x6d   :  { %v371_v50 = vor.u32 1.1754944e-38, %v370_v6  ;;  %vm369_vm3 = vcmp.eq.f32.partialorder %v368_v10, 8.507059e+37 }
  0x71   :  { %v426_v39 = vpop.eup %425 }
  0x72   :  { %v360_v45 = vmul.f32 %v426_v39, %v358_v26  ;;  %vm365_vm0 = vweird.f32 %v426_v39 }
  0x73   :  { %vm366_vm2 = vmor %vm364_vm1, %vm365_vm0 }
  0x74   :  { %v361_v4 = vsub.f32 1.0, %v360_v45 }
  0x76   :  { %v362_v63 = vmul.f32 %v426_v39, %v361_v4 }
  0x78   :  { %v363_v49 = vadd.f32 %v426_v39, %v362_v63 }
  0x7a   :  { %v367_v27 = vsel %vm366_vm2, %v426_v39, %v363_v49 }
  0x7b   :  { %v372_v0 = vsel %vm369_vm3, %v371_v50, %v367_v27 }
  0x7c   :  { %373 = vst [vmem:[#allocation11] sm:$0x1] %v372_v0 }
  0x7d   :  { %397 = dma.vmem_to_hbm [thread:$0]  %s393_s23, 16, %s395_s26, [#allocation12]  }
  0x7e   :  { %565 = dma.done.wait [#allocation4], 2048  }
  0x7f   :  { %566 = vsyncadd [#allocation4], 4294965248 }
  0x80   :  { %567 = dma.done.wait [#allocation12], 16  }
  0x81   :  { %568 = vsyncadd [#allocation12], 4294967280 }
  0x82   :  { %406 = vsyncpa [#allocation3], 1 }
  0x83   :  { %407 = vsyncpa [#allocation8], 1 }
  0x84   :  { %408 = vsyncpa [#allocation4], 1 }
  0x85   :  { %409 = vsyncpa [#allocation12], 1 }
  0x86   :  { %410 = vsyncpa [#allocation5], 1 }

</bundles_post_ra>
